<compile_context>
chip_gen: v7x
topology: tpu7x:2x2x1
jax: 0.10.0
libtpu: 0.0.40
codegen_flags: <defaults>
</compile_context>

<pallas_src>
import functools

import jax
import jax.numpy as jnp
from jax.experimental import pallas as pl
from jax.experimental.pallas import tpu as pltpu

# GLSL-style hash constants (optional fidelity path).
_KX = 12.9898
_KY = 78.233
_AMP = 43758.5453

# Integer-hash constants (default, exact-arithmetic path).
_HX = 0x85EBCA6B          # lattice-x weight
_HY = 0xC2B2AE35          # lattice-y weight
_M1 = 0x7FEB352D          # xorshift-multiply mixers
_M2 = 0x846CA68B
_INV_2_23 = 1.0 / 8388608.0


def _round_up(x, m):
    return ((x + m - 1) // m) * m


def _pick_tile(total, align, cap):
    """Largest multiple of `align` that divides `total` and is <= cap."""
    best = align
    t = align
    limit = min(cap, total)
    while t <= limit:
        if total % t == 0:
            best = t
        t += align
    return best


def _hash01_u32(h):
    """uint32 -> f32 in [0,1). Every op is exact -> backend-reproducible."""
    h = h ^ (h >> 16)
    h = h * jnp.uint32(_M1)
    h = h ^ (h >> 15)
    h = h * jnp.uint32(_M2)
    h = h ^ (h >> 16)
    m = (h & jnp.uint32(0x007FFFFF)).astype(jnp.int32)   # 23 bits: exact in f32
    return m.astype(jnp.float32) * jnp.float32(_INV_2_23)


def _fract_sin(angle):
    v = jnp.sin(angle) * _AMP
    return v - jnp.floor(v)


def _noise_kernel(cx_ref, cy_ref, fx_ref, fy_ref, seed_ref, out_ref, *, sin_hash):
    fx = fx_ref[...]                    # [bf_tile, p_tile] fractional x
    fy = fy_ref[...]                    # [bf_tile, p_tile] fractional y

    if sin_hash:
        # GLSL fract(sin(.)*43758.5453) hash: closest to the presumed
        # noise_cuda hash, but NOT bit-reproducible across backends (sin ULP
        # differences are amplified x43758), so it is not asserted against.
        base = cx_ref[...] * _KX + cy_ref[...] * _KY + seed_ref[...]
        a = _fract_sin(base)
        b = _fract_sin(base + _KX)
        c = _fract_sin(base + _KY)
        d = _fract_sin(base + (_KX + _KY))
    else:
        # Exact integer lattice hash. Corner reuse: corner(1,0)=corner(0,0)+HX
        # etc.; seed broadcast [bf,1]->[bf,p] happens exactly once in `base`.
        ix = cx_ref[...].astype(jnp.int32).astype(jnp.uint32)
        iy = cy_ref[...].astype(jnp.int32).astype(jnp.uint32)
        s = seed_ref[...]               # uint32 [bf_tile, 1] (raw f32 seed bits)
        base = ix * jnp.uint32(_HX) + iy * jnp.uint32(_HY) + s
        a = _hash01_u32(base)                                      # corner (0,0)
        b = _hash01_u32(base + jnp.uint32(_HX))                    # corner (1,0)
        c = _hash01_u32(base + jnp.uint32(_HY))                    # corner (0,1)
        d = _hash01_u32(base + jnp.uint32(_HX) + jnp.uint32(_HY))  # corner (1,1)

    # TODO(synk): noise_cuda's interpolant is unverified; smoothstep fade +
    # bilinear lerp assumed (gradients flow only through fx/fy, matching the
    # autograd Function which zeros the integer-lattice half).
    ux = fx * fx * (3.0 - 2.0 * fx)
    uy = fy * fy * (3.0 - 2.0 * fy)
    nx0 = a + ux * (b - a)
    nx1 = c + ux * (d - c)
    out_ref[...] = nx0 + uy * (nx1 - nx0)


def noise_forward(position, seed, *, sin_hash=False):
    """position: [2, B, F, 2, P], seed: [B, F] -> noise: [B, F, P] float32."""
    two, B, F, D, P = position.shape
    assert two == 2 and D == 2, "kernel implements 2-D (bilinear) value noise"
    BF = B * F

    pos = position.astype(jnp.float32).reshape(2, BF, D, P)       # free reshape

    # ---- tile selection ----------------------------------------------------
    # Target ~10 MiB double-buffered working set:
    #   2 bufs x (4 in + 1 out) x bf_tile x p_tile x 4 B  <= 40 * 64 * 4096 B.
    # Prefer tiles that DIVIDE the 8/128-aligned extents -> no pad / no slice
    # (no extra HBM passes) in the common case.
    P_pad = _round_up(P, 128)
    p_tile = _pick_tile(P_pad, 128, 8192)
    BF_pad = _round_up(BF, 8)
    elem_budget = 64 * 4096                       # 256K f32 = 1 MiB per buffer
    bf_cap = max(8, min(64, elem_budget // p_tile))
    bf_tile = _pick_tile(BF_pad, 8, bf_cap)

    if BF_pad != BF or P_pad != P:
        # Rare unaligned path: pads < 8 rows / < 128 cols only.
        pos = jnp.pad(pos, ((0, 0), (0, BF_pad - BF), (0, 0), (0, P_pad - P)))

    # Merge (plane, BF) -> rows and (D, P) -> cols: one lane-dense 2-D array,
    # four disjoint BlockSpec views, no extra HBM materialization.
    pos_flat = pos.reshape(2 * BF_pad, 2 * P_pad)

    if sin_hash:
        seed_arr = seed.astype(jnp.float32).reshape(BF, 1)
    else:
        # Mix raw f32 seed bits into the integer hash (exact on every backend).
        seed_arr = jax.lax.bitcast_convert_type(
            seed.astype(jnp.float32), jnp.uint32).reshape(BF, 1)
    if BF_pad != BF:
        seed_arr = jnp.pad(seed_arr, ((0, BF_pad - BF), (0, 0)))

    n_p = P_pad // p_tile
    n_bf = BF_pad // bf_tile
    # P-tile axis first: v7x megacore shards the leading "parallel" axis, and
    # P normally has more blocks than BF.
    grid = (n_p, n_bf)

    in_specs = [
        pl.BlockSpec((bf_tile, p_tile), lambda jp, ib: (ib, jp)),               # cell x
        pl.BlockSpec((bf_tile, p_tile), lambda jp, ib: (ib, jp + n_p)),         # cell y
        pl.BlockSpec((bf_tile, p_tile), lambda jp, ib: (ib + n_bf, jp)),        # frac x
        pl.BlockSpec((bf_tile, p_tile), lambda jp, ib: (ib + n_bf, jp + n_p)),  # frac y
        pl.BlockSpec((bf_tile, 1), lambda jp, ib: (ib, 0)),                     # seed
    ]
    out_spec = pl.BlockSpec((bf_tile, p_tile), lambda jp, ib: (ib, jp))

    n_elem = BF_pad * P_pad
    cost = pl.CostEstimate(
        flops=60 * n_elem,
        transcendentals=(4 * n_elem) if sin_hash else 0,
        bytes_accessed=20 * n_elem,           # 4 input planes + 1 output, f32
    )

    out = pl.pallas_call(
        functools.partial(_noise_kernel, sin_hash=sin_hash),
        out_shape=jax.ShapeDtypeStruct((BF_pad, P_pad), jnp.float32),
        grid_spec=pltpu.PrefetchScalarGridSpec(
            num_scalar_prefetch=0,
            grid=grid,
            in_specs=in_specs,
            out_specs=out_spec,
        ),
        compiler_params=pltpu.CompilerParams(
            dimension_semantics=("parallel", "parallel"),
            # >= v5e's 16 MiB scoped default, == v6e/v7x default, well under
            # v7x's 64 MiB physical VMEM (working set <= ~10.5 MiB).
            vmem_limit_bytes=32 * 1024 * 1024,
        ),
        cost_estimate=cost,
    )(pos_flat, pos_flat, pos_flat, pos_flat, seed_arr)

    if BF_pad != BF or P_pad != P:
        out = out[:BF, :P]
    return out.reshape(B, F, P)


def _noise_reference(position, seed, *, sin_hash=False):
    """Plain-JAX reference with op-for-op identical math (correctness check)."""
    cell = position[0].astype(jnp.float32)     # [B, F, 2, P]
    frac = position[1].astype(jnp.float32)
    cx, cy = cell[:, :, 0, :], cell[:, :, 1, :]
    fx, fy = frac[:, :, 0, :], frac[:, :, 1, :]

    if sin_hash:
        s = seed.astype(jnp.float32)[:, :, None]
        base = cx * _KX + cy * _KY + s
        a = _fract_sin(base)
        b = _fract_sin(base + _KX)
        c = _fract_sin(base + _KY)
        d = _fract_sin(base + (_KX + _KY))
    else:
        ix = cx.astype(jnp.int32).astype(jnp.uint32)
        iy = cy.astype(jnp.int32).astype(jnp.uint32)
        s = jax.lax.bitcast_convert_type(
            seed.astype(jnp.float32), jnp.uint32)[:, :, None]
        base = ix * jnp.uint32(_HX) + iy * jnp.uint32(_HY) + s
        a = _hash01_u32(base)
        b = _hash01_u32(base + jnp.uint32(_HX))
        c = _hash01_u32(base + jnp.uint32(_HY))
        d = _hash01_u32(base + jnp.uint32(_HX) + jnp.uint32(_HY))

    ux = fx * fx * (3.0 - 2.0 * fx)
    uy = fy * fy * (3.0 - 2.0 * fy)
    nx0 = a + ux * (b - a)
    nx1 = c + ux * (d - c)
    return nx0 + uy * (nx1 - nx0)


if __name__ == "__main__":
    key = jax.random.PRNGKey(0)
    B, F, H, W, D = 2, 4, 16, 16, 2       # F = octaves * noise channels
    P = H * W

    k1, k2 = jax.random.split(key)
    # Continuous sample coordinates (e.g. a transformed pixel grid), split into
    # integer lattice cell + fractional part, stacked along a leading axis of 2
    # exactly as the autograd Function expects.
    coords = jax.random.uniform(k1, (B, F, D, P), dtype=jnp.float32) * 8.0
    cell = jnp.floor(coords)
    frac = coords - cell
    position = jnp.stack([cell, frac], axis=0)          # [2, B, F, D, P]
    seed = jax.random.uniform(k2, (B, F), dtype=jnp.float32) * 100.0

    noise = noise_forward(position, seed)
    jax.block_until_ready(noise)

    ref = _noise_reference(position, seed)
    assert noise.shape == (B, F, P)
    assert bool(jnp.all(jnp.isfinite(noise)))
    max_err = float(jnp.max(jnp.abs(noise - ref)))
    assert max_err < 1e-4, f"max abs err {max_err}"

    print("KERNEL_OK")
</pallas_src>

<mosaic_0001>
module attributes {stable_mosaic.version = 11 : i64} {
  func.func @_noise_kernel(%arg0: i32, %arg1: i32, %arg2: memref<8x256xf32, #tpu.memory_space<vmem>>, %arg3: memref<8x256xf32, #tpu.memory_space<vmem>>, %arg4: memref<8x256xf32, #tpu.memory_space<vmem>>, %arg5: memref<8x256xf32, #tpu.memory_space<vmem>>, %arg6: memref<8x1xi32, #tpu.memory_space<vmem>>, %arg7: memref<8x256xf32, #tpu.memory_space<vmem>>) attributes {dimension_semantics = [#tpu.dimension_semantics<parallel>, #tpu.dimension_semantics<parallel>], iteration_bounds = array<i64: 1, 1>, scalar_prefetch = 0 : i64, scratch_operands = 0 : i64, tpu.core_type = #tpu.core_type<tc>, window_params = [{transform_indices = @transform_0, window_bounds = array<i64: 8, 256>}, {transform_indices = @transform_1, window_bounds = array<i64: 8, 256>}, {transform_indices = @transform_2, window_bounds = array<i64: 8, 256>}, {transform_indices = @transform_3, window_bounds = array<i64: 8, 256>}, {transform_indices = @transform_4, window_bounds = array<i64: 8, 1>}, {transform_indices = @transform_5, window_bounds = array<i64: 8, 256>}]} {
    %c0 = arith.constant 0 : index
    %c0_0 = arith.constant 0 : index
    %0 = vector.load %arg4[%c0, %c0_0] : memref<8x256xf32, #tpu.memory_space<vmem>>, vector<8x256xf32>
    %c0_1 = arith.constant 0 : index
    %c0_2 = arith.constant 0 : index
    %1 = vector.load %arg5[%c0_1, %c0_2] : memref<8x256xf32, #tpu.memory_space<vmem>>, vector<8x256xf32>
    %c0_3 = arith.constant 0 : index
    %c0_4 = arith.constant 0 : index
    %2 = vector.load %arg2[%c0_3, %c0_4] : memref<8x256xf32, #tpu.memory_space<vmem>>, vector<8x256xf32>
    %3 = arith.fptosi %2 : vector<8x256xf32> to vector<8x256xi32>
    %c0_5 = arith.constant 0 : index
    %c0_6 = arith.constant 0 : index
    %4 = vector.load %arg3[%c0_5, %c0_6] : memref<8x256xf32, #tpu.memory_space<vmem>>, vector<8x256xf32>
    %5 = arith.fptosi %4 : vector<8x256xf32> to vector<8x256xi32>
    %c0_7 = arith.constant 0 : index
    %c0_8 = arith.constant 0 : index
    %6 = vector.load %arg6[%c0_7, %c0_8] : memref<8x1xi32, #tpu.memory_space<vmem>>, vector<8x1xi32>
    %c-2048144789_i32 = arith.constant -2048144789 : i32
    %7 = vector.broadcast %c-2048144789_i32 : i32 to vector<8x256xi32>
    %8 = arith.muli %3, %7 : vector<8x256xi32>
    %c-1028477387_i32 = arith.constant -1028477387 : i32
    %9 = vector.broadcast %c-1028477387_i32 : i32 to vector<8x256xi32>
    %10 = arith.muli %5, %9 : vector<8x256xi32>
    %11 = arith.addi %8, %10 : vector<8x256xi32>
    %12 = vector.broadcast %6 : vector<8x1xi32> to vector<8x256xi32>
    %13 = arith.addi %11, %12 : vector<8x256xi32>
    %c16_i32 = arith.constant 16 : i32
    %14 = vector.broadcast %c16_i32 : i32 to vector<8x256xi32>
    %15 = arith.shrui %13, %14 : vector<8x256xi32>
    %16 = arith.xori %13, %15 : vector<8x256xi32>
    %c2146121005_i32 = arith.constant 2146121005 : i32
    %17 = vector.broadcast %c2146121005_i32 : i32 to vector<8x256xi32>
    %18 = arith.muli %16, %17 : vector<8x256xi32>
    %c15_i32 = arith.constant 15 : i32
    %19 = vector.broadcast %c15_i32 : i32 to vector<8x256xi32>
    %20 = arith.shrui %18, %19 : vector<8x256xi32>
    %21 = arith.xori %18, %20 : vector<8x256xi32>
    %c-2073254261_i32 = arith.constant -2073254261 : i32
    %22 = vector.broadcast %c-2073254261_i32 : i32 to vector<8x256xi32>
    %23 = arith.muli %21, %22 : vector<8x256xi32>
    %c16_i32_9 = arith.constant 16 : i32
    %24 = vector.broadcast %c16_i32_9 : i32 to vector<8x256xi32>
    %25 = arith.shrui %23, %24 : vector<8x256xi32>
    %26 = arith.xori %23, %25 : vector<8x256xi32>
    %c8388607_i32 = arith.constant 8388607 : i32
    %27 = vector.broadcast %c8388607_i32 : i32 to vector<8x256xi32>
    %28 = arith.andi %26, %27 : vector<8x256xi32>
    %29 = arith.sitofp %28 : vector<8x256xi32> to vector<8x256xf32>
    %cst = arith.constant 1.1920929E-7 : f32
    %30 = vector.broadcast %cst : f32 to vector<8x256xf32>
    %31 = arith.mulf %29, %30 : vector<8x256xf32>
    %c-2048144789_i32_10 = arith.constant -2048144789 : i32
    %32 = vector.broadcast %c-2048144789_i32_10 : i32 to vector<8x256xi32>
    %33 = arith.addi %13, %32 : vector<8x256xi32>
    %c16_i32_11 = arith.constant 16 : i32
    %34 = vector.broadcast %c16_i32_11 : i32 to vector<8x256xi32>
    %35 = arith.shrui %33, %34 : vector<8x256xi32>
    %36 = arith.xori %33, %35 : vector<8x256xi32>
    %c2146121005_i32_12 = arith.constant 2146121005 : i32
    %37 = vector.broadcast %c2146121005_i32_12 : i32 to vector<8x256xi32>
    %38 = arith.muli %36, %37 : vector<8x256xi32>
    %c15_i32_13 = arith.constant 15 : i32
    %39 = vector.broadcast %c15_i32_13 : i32 to vector<8x256xi32>
    %40 = arith.shrui %38, %39 : vector<8x256xi32>
    %41 = arith.xori %38, %40 : vector<8x256xi32>
    %c-2073254261_i32_14 = arith.constant -2073254261 : i32
    %42 = vector.broadcast %c-2073254261_i32_14 : i32 to vector<8x256xi32>
    %43 = arith.muli %41, %42 : vector<8x256xi32>
    %c16_i32_15 = arith.constant 16 : i32
    %44 = vector.broadcast %c16_i32_15 : i32 to vector<8x256xi32>
    %45 = arith.shrui %43, %44 : vector<8x256xi32>
    %46 = arith.xori %43, %45 : vector<8x256xi32>
    %c8388607_i32_16 = arith.constant 8388607 : i32
    %47 = vector.broadcast %c8388607_i32_16 : i32 to vector<8x256xi32>
    %48 = arith.andi %46, %47 : vector<8x256xi32>
    %49 = arith.sitofp %48 : vector<8x256xi32> to vector<8x256xf32>
    %cst_17 = arith.constant 1.1920929E-7 : f32
    %50 = vector.broadcast %cst_17 : f32 to vector<8x256xf32>
    %51 = arith.mulf %49, %50 : vector<8x256xf32>
    %c-1028477387_i32_18 = arith.constant -1028477387 : i32
    %52 = vector.broadcast %c-1028477387_i32_18 : i32 to vector<8x256xi32>
    %53 = arith.addi %13, %52 : vector<8x256xi32>
    %c16_i32_19 = arith.constant 16 : i32
    %54 = vector.broadcast %c16_i32_19 : i32 to vector<8x256xi32>
    %55 = arith.shrui %53, %54 : vector<8x256xi32>
    %56 = arith.xori %53, %55 : vector<8x256xi32>
    %c2146121005_i32_20 = arith.constant 2146121005 : i32
    %57 = vector.broadcast %c2146121005_i32_20 : i32 to vector<8x256xi32>
    %58 = arith.muli %56, %57 : vector<8x256xi32>
    %c15_i32_21 = arith.constant 15 : i32
    %59 = vector.broadcast %c15_i32_21 : i32 to vector<8x256xi32>
    %60 = arith.shrui %58, %59 : vector<8x256xi32>
    %61 = arith.xori %58, %60 : vector<8x256xi32>
    %c-2073254261_i32_22 = arith.constant -2073254261 : i32
    %62 = vector.broadcast %c-2073254261_i32_22 : i32 to vector<8x256xi32>
    %63 = arith.muli %61, %62 : vector<8x256xi32>
    %c16_i32_23 = arith.constant 16 : i32
    %64 = vector.broadcast %c16_i32_23 : i32 to vector<8x256xi32>
    %65 = arith.shrui %63, %64 : vector<8x256xi32>
    %66 = arith.xori %63, %65 : vector<8x256xi32>
    %c8388607_i32_24 = arith.constant 8388607 : i32
    %67 = vector.broadcast %c8388607_i32_24 : i32 to vector<8x256xi32>
    %68 = arith.andi %66, %67 : vector<8x256xi32>
    %69 = arith.sitofp %68 : vector<8x256xi32> to vector<8x256xf32>
    %cst_25 = arith.constant 1.1920929E-7 : f32
    %70 = vector.broadcast %cst_25 : f32 to vector<8x256xf32>
    %71 = arith.mulf %69, %70 : vector<8x256xf32>
    %c-2048144789_i32_26 = arith.constant -2048144789 : i32
    %72 = vector.broadcast %c-2048144789_i32_26 : i32 to vector<8x256xi32>
    %73 = arith.addi %13, %72 : vector<8x256xi32>
    %c-1028477387_i32_27 = arith.constant -1028477387 : i32
    %74 = vector.broadcast %c-1028477387_i32_27 : i32 to vector<8x256xi32>
    %75 = arith.addi %73, %74 : vector<8x256xi32>
    %c16_i32_28 = arith.constant 16 : i32
    %76 = vector.broadcast %c16_i32_28 : i32 to vector<8x256xi32>
    %77 = arith.shrui %75, %76 : vector<8x256xi32>
    %78 = arith.xori %75, %77 : vector<8x256xi32>
    %c2146121005_i32_29 = arith.constant 2146121005 : i32
    %79 = vector.broadcast %c2146121005_i32_29 : i32 to vector<8x256xi32>
    %80 = arith.muli %78, %79 : vector<8x256xi32>
    %c15_i32_30 = arith.constant 15 : i32
    %81 = vector.broadcast %c15_i32_30 : i32 to vector<8x256xi32>
    %82 = arith.shrui %80, %81 : vector<8x256xi32>
    %83 = arith.xori %80, %82 : vector<8x256xi32>
    %c-2073254261_i32_31 = arith.constant -2073254261 : i32
    %84 = vector.broadcast %c-2073254261_i32_31 : i32 to vector<8x256xi32>
    %85 = arith.muli %83, %84 : vector<8x256xi32>
    %c16_i32_32 = arith.constant 16 : i32
    %86 = vector.broadcast %c16_i32_32 : i32 to vector<8x256xi32>
    %87 = arith.shrui %85, %86 : vector<8x256xi32>
    %88 = arith.xori %85, %87 : vector<8x256xi32>
    %c8388607_i32_33 = arith.constant 8388607 : i32
    %89 = vector.broadcast %c8388607_i32_33 : i32 to vector<8x256xi32>
    %90 = arith.andi %88, %89 : vector<8x256xi32>
    %91 = arith.sitofp %90 : vector<8x256xi32> to vector<8x256xf32>
    %cst_34 = arith.constant 1.1920929E-7 : f32
    %92 = vector.broadcast %cst_34 : f32 to vector<8x256xf32>
    %93 = arith.mulf %91, %92 : vector<8x256xf32>
    %94 = arith.mulf %0, %0 : vector<8x256xf32>
    %cst_35 = arith.constant 2.000000e+00 : f32
    %95 = vector.broadcast %cst_35 : f32 to vector<8x256xf32>
    %96 = arith.mulf %95, %0 : vector<8x256xf32>
    %cst_36 = arith.constant 3.000000e+00 : f32
    %97 = vector.broadcast %cst_36 : f32 to vector<8x256xf32>
    %98 = arith.subf %97, %96 : vector<8x256xf32>
    %99 = arith.mulf %94, %98 : vector<8x256xf32>
    %100 = arith.mulf %1, %1 : vector<8x256xf32>
    %cst_37 = arith.constant 2.000000e+00 : f32
    %101 = vector.broadcast %cst_37 : f32 to vector<8x256xf32>
    %102 = arith.mulf %101, %1 : vector<8x256xf32>
    %cst_38 = arith.constant 3.000000e+00 : f32
    %103 = vector.broadcast %cst_38 : f32 to vector<8x256xf32>
    %104 = arith.subf %103, %102 : vector<8x256xf32>
    %105 = arith.mulf %100, %104 : vector<8x256xf32>
    %106 = arith.subf %51, %31 : vector<8x256xf32>
    %107 = arith.mulf %99, %106 : vector<8x256xf32>
    %108 = arith.addf %31, %107 : vector<8x256xf32>
    %109 = arith.subf %93, %71 : vector<8x256xf32>
    %110 = arith.mulf %99, %109 : vector<8x256xf32>
    %111 = arith.addf %71, %110 : vector<8x256xf32>
    %112 = arith.subf %111, %108 : vector<8x256xf32>
    %113 = arith.mulf %105, %112 : vector<8x256xf32>
    %114 = arith.addf %108, %113 : vector<8x256xf32>
    %c0_39 = arith.constant 0 : index
    %c0_40 = arith.constant 0 : index
    %115 = vector.load %arg7[%c0_39, %c0_40] : memref<8x256xf32, #tpu.memory_space<vmem>>, vector<8x256xf32>
    tpu.vector_store %arg7[%c0_39, %c0_40], %114 {strides = array<i32>} : memref<8x256xf32, #tpu.memory_space<vmem>>, vector<8x256xf32>,
    return
  }
  func.func @transform_0(%arg0: i32, %arg1: i32) -> (i32, i32) {
    %c0_i32 = arith.constant 0 : i32
    return %arg1, %arg0 : i32, i32
  }
  func.func @transform_1(%arg0: i32, %arg1: i32) -> (i32, i32) {
    %c1_i32 = arith.constant 1 : i32
    %0 = arith.addi %arg0, %c1_i32 : i32
    %c0_i32 = arith.constant 0 : i32
    return %arg1, %0 : i32, i32
  }
  func.func @transform_2(%arg0: i32, %arg1: i32) -> (i32, i32) {
    %c1_i32 = arith.constant 1 : i32
    %0 = arith.addi %arg1, %c1_i32 : i32
    %c0_i32 = arith.constant 0 : i32
    return %0, %arg0 : i32, i32
  }
  func.func @transform_3(%arg0: i32, %arg1: i32) -> (i32, i32) {
    %c1_i32 = arith.constant 1 : i32
    %0 = arith.addi %arg1, %c1_i32 : i32
    %c1_i32_0 = arith.constant 1 : i32
    %1 = arith.addi %arg0, %c1_i32_0 : i32
    %c0_i32 = arith.constant 0 : i32
    return %0, %1 : i32, i32
  }
  func.func @transform_4(%arg0: i32, %arg1: i32) -> (i32, i32) {
    %c0_i32 = arith.constant 0 : i32
    %c0_i32_0 = arith.constant 0 : i32
    return %arg1, %c0_i32 : i32, i32
  }
  func.func @transform_5(%arg0: i32, %arg1: i32) -> (i32, i32) {
    %c0_i32 = arith.constant 0 : i32
    return %arg1, %arg0 : i32, i32
  }
}

</mosaic_0001>

<bundles_post_ra>
// kernel: tpu_custom_call.1
= control target key start
LH: loop header
LB: loop body
LE: loop exit
PB: predicated region body
PF: predicated region fallthrough
CT: control target
= control target key end

     0   :  { %10 = vsyncpa [#allocation3], 0  ;;  %s532_s0 = inlined_call_operand.hbm [shape: f32[16,512], index: 0, kind: input, shape index: {}]   ;;  %s533_s1 = inlined_call_operand.hbm [shape: f32[16,512], index: 1, kind: input, shape index: {}]   ;;  %s534_s2 = inlined_call_operand.hbm [shape: f32[16,512], index: 2, kind: input, shape index: {}]   ;;  %s535_s3 = inlined_call_operand.hbm [shape: f32[16,512], index: 3, kind: input, shape index: {}]   ;;  %s536_s4 = inlined_call_operand.vmem [shape: u32[8,1], index: 4, kind: input, shape index: {}]   ;;  %s537_s5 = inlined_call_operand.hbm [shape: f32[8,256], index: 5, kind: output, shape index: {}]  }
   0x1   :  { %11 = vsyncpa [#allocation6], 0 }
   0x2   :  { %12 = vsyncpa [#allocation9], 0  ;;  %s260_s20 = scalar_lea.hbm %s533_s1, 256 }
   0x3   :  { %13 = vsyncpa [#allocation4], 0  ;;  %s405_s21 = smov [#allocation5]   ;;  %s406_s23 = smov [#allocation2]  }
   0x4   :  { %s34_s22 = sshll.u32 %s405_s21, 4  ;;  %s20_s24 = sshll.u32 %s406_s23, 4  ;;  %s35_s22 = int_to_ptr.vmem [resolvable:$true] %s34_s22  ;;  %s21_s24 = int_to_ptr.vmem [resolvable:$true] %s20_s24 }
   0x5   :  { %s302_s27 = scalar_lea.hbm %s533_s1, 512  ;;  %s280_s30 = scalar_lea.hbm %s533_s1, 1024 }
   0x6   :  { %p279_p0 = scmp.ne.s32.totalorder %s260_s20, %s302_s27  ;;  %p281_p1 = scmp.lt.u32.totalorder %s260_s20, %s533_s1 }
   0x7   :  { %p282_p2 = scmp.lt.u32.totalorder %s280_s30, %s302_s27  ;;  %p284_p4 = scmp.lt.u32.totalorder %s302_s27, %s260_s20 }
   0x9   :  { %p283_p3 = por %p282_p2, %p281_p1 }
   0xb   :  { %p285_p5 = por %p284_p4, %p283_p3 }
   0xd   :  { %p286_p6 = pnand %p285_p5, %p279_p0 }
   0xf   :  { %289 = shalt.err (!%p286_p6)
}
  0x10   :  { %s290_s8 = scalar_lea.vmem %s35_s22, 256  ;;  %p295_p8 = scmp.lt.s32.totalorder %s35_s22, %s35_s22 }
  0x11   :  { %p291_p7 = scmp.ne.s32.totalorder %s35_s22, %s290_s8  ;;  %p296_p9 = scmp.lt.s32.totalorder %s290_s8, %s290_s8 }
  0x13   :  { %p297_p10 = por %p296_p9, %p295_p8 }
  0x15   :  { %p298_p11 = pnand %p297_p10, %p291_p7 }
  0x17   :  { %301 = shalt.err (!%p298_p11)
}
  0x18   :  { %37 = dma.hbm_to_vmem [thread:$0]  %s260_s20, 256, %s35_s22, [#allocation6]  }
  0x19   :  { %s456_s11 = scalar_lea.hbm %s534_s2, 512  ;;  %s303_s13 = scalar_lea.hbm %s532_s0, 256 }
  0x1a   :  { %p304_p12 = scmp.ne.s32.totalorder %s532_s0, %s303_s13  ;;  %s305_s18 = scalar_lea.hbm %s532_s0, 1024 }
  0x1b   :  { %p306_p13 = scmp.lt.u32.totalorder %s305_s18, %s303_s13  ;;  %p307_p0 = scmp.lt.u32.totalorder %s303_s13, %s532_s0 }
  0x1d   :  { %p308_p1 = por %p307_p0, %p306_p13 }
  0x1f   :  { %p309_p2 = pnand %p308_p1, %p304_p12 }
  0x21   :  { %312 = shalt.err (!%p309_p2)
}
  0x22   :  { %s313_s21 = scalar_lea.vmem %s21_s24, 256  ;;  %p318_p4 = scmp.lt.s32.totalorder %s21_s24, %s21_s24 }
  0x23   :  { %p314_p3 = scmp.ne.s32.totalorder %s21_s24, %s313_s21  ;;  %p319_p5 = scmp.lt.s32.totalorder %s313_s21, %s313_s21 }
  0x25   :  { %p320_p6 = por %p319_p5, %p318_p4 }
  0x27   :  { %p321_p7 = pnand %p320_p6, %p314_p3 }
  0x29   :  { %324 = shalt.err (!%p321_p7)
}
  0x2a   :  { %23 = dma.hbm_to_vmem [thread:$0]  %s532_s0, 256, %s21_s24, [#allocation3]  }
  0x2b   :  { %s476_s27 = scalar_lea.hbm %s535_s3, 768  ;;  %s407_s28 = smov [#allocation7]  }
  0x2c   :  { %s48_s29 = sshll.u32 %s407_s28, 4  ;;  %s408_s30 = smov [#allocation8]   ;;  %s49_s29 = int_to_ptr.vmem [resolvable:$true] %s48_s29 }
  0x2d   :  { %s65_s6 = sshll.u32 %s408_s30, 4  ;;  %s349_s9 = scalar_lea.hbm %s534_s2, 768  ;;  %s66_s6 = int_to_ptr.vmem [resolvable:$true] %s65_s6 }
  0x2e   :  { %p326_p8 = scmp.ne.s32.totalorder %s456_s11, %s349_s9  ;;  %s327_s12 = scalar_lea.hbm %s534_s2, 1024 }
  0x2f   :  { %p328_p9 = scmp.lt.u32.totalorder %s456_s11, %s534_s2  ;;  %p329_p10 = scmp.lt.u32.totalorder %s327_s12, %s349_s9 }
  0x30   :  { %p331_p12 = scmp.lt.u32.totalorder %s349_s9, %s456_s11 }
  0x31   :  { %p330_p11 = por %p329_p10, %p328_p9 }
  0x33   :  { %p332_p13 = por %p331_p12, %p330_p11 }
  0x35   :  { %p333_p0 = pnand %p332_p13, %p326_p8 }
  0x37   :  { %336 = shalt.err (!%p333_p0)
}
  0x38   :  { %s337_s13 = scalar_lea.vmem %s49_s29, 256  ;;  %p342_p2 = scmp.lt.s32.totalorder %s49_s29, %s49_s29 }
  0x39   :  { %p338_p1 = scmp.ne.s32.totalorder %s49_s29, %s337_s13  ;;  %p343_p3 = scmp.lt.s32.totalorder %s337_s13, %s337_s13 }
  0x3b   :  { %p344_p4 = por %p343_p3, %p342_p2 }
  0x3d   :  { %p345_p5 = pnand %p344_p4, %p338_p1 }
  0x3f   :  { %348 = shalt.err (!%p345_p5)
}
  0x40   :  { %51 = dma.hbm_to_vmem [thread:$0]  %s456_s11, 256, %s49_s29, [#allocation6]  }
  0x41   :  { %s374_s15 = scalar_lea.hbm %s535_s3, 1024  ;;  %p353_p7 = scmp.lt.u32.totalorder %s476_s27, %s535_s3 }
  0x42   :  { %p351_p6 = scmp.ne.s32.totalorder %s476_s27, %s374_s15  ;;  %p354_p8 = scmp.lt.u32.totalorder %s374_s15, %s374_s15 }
  0x43   :  { %p356_p10 = scmp.lt.u32.totalorder %s374_s15, %s476_s27 }
  0x44   :  { %p355_p9 = por %p354_p8, %p353_p7 }
  0x46   :  { %p357_p11 = por %p356_p10, %p355_p9 }
  0x48   :  { %p358_p12 = pnand %p357_p11, %p351_p6 }
  0x4a   :  { %361 = shalt.err (!%p358_p12)
}
  0x4b   :  { %s362_s18 = scalar_lea.vmem %s66_s6, 256  ;;  %p367_p0 = scmp.lt.s32.totalorder %s66_s6, %s66_s6 }
  0x4c   :  { %p363_p13 = scmp.ne.s32.totalorder %s66_s6, %s362_s18  ;;  %p368_p1 = scmp.lt.s32.totalorder %s362_s18, %s362_s18 }
  0x4e   :  { %p369_p2 = por %p368_p1, %p367_p0 }
  0x50   :  { %p370_p3 = pnand %p369_p2, %p363_p13 }
  0x52   :  { %373 = shalt.err (!%p370_p3)
}
  0x53   :  { %68 = dma.hbm_to_vmem [thread:$0]  %s476_s27, 256, %s66_s6, [#allocation9]  }
  0x54   :  { %397 = dma.done.wait [#allocation3], 256  }
  0x55   :  { %398 = vsyncadd [#allocation3], 4294967040 }
  0x56   :  { %399 = dma.done.wait [#allocation6], 512  }
  0x57   :  { %400 = vsyncadd [#allocation6], 4294966784 }
  0x58   :  { %401 = dma.done.wait [#allocation9], 256  }
  0x59   :  { %402 = vsyncadd [#allocation9], 4294967040  ;;  %v409_v0 = vmov 0   ;;  %v101_v1 = vld [vmem:[%s536_s4] sm:$0xff]  ;;  %v94_v3 = vld [vmem:[#allocation2 + $0x8] sm:$0xff]  ;;  %s410_s4 = smov [#allocation10]  }
  0x5a   :  { %277 = vset.pattern.permute.xlu0 %v409_v0  ;;  %v93_v2 = vld [vmem:[#allocation2] sm:$0xff]  ;;  %v97_v4 = vld [vmem:[#allocation5] sm:$0xff]  ;;  %v98_v5 = vld [vmem:[#allocation5 + $0x8] sm:$0xff]  ;;  %v265_v7 = vtrunc.f32 %v94_v3  ;;  %s249_s19 = sshll.u32 %s410_s4, 4  ;;  %s250_s19 = int_to_ptr.vmem [resolvable:$true] %s249_s19 }
  0x5b   :  { %109 = vperm.xlu0 %277, %v101_v1   ;;  %v263_v6 = vtrunc.f32 %v93_v2  ;;  %v267_v8 = vtrunc.f32 %v97_v4  ;;  %v269_v9 = vtrunc.f32 %v98_v5  ;;  %v89_v20 = vld [vmem:[#allocation7] sm:$0xff]  ;;  %v90_v21 = vld [vmem:[#allocation7 + $0x8] sm:$0xff]  ;;  %s375_s20 = scalar_lea.vmem %s250_s19, 256  ;;  %p380_p5 = scmp.lt.s32.totalorder %s250_s19, %s250_s19 }
  0x5c   :  { %v266_v11 = vcvt.f32.s32 %v265_v7  ;;  %v504_v23 = vmul.f32 2.0, %v89_v20  ;;  %v506_v24 = vmul.f32 2.0, %v90_v21  ;;  %v508_v27 = vmul.f32 %v89_v20, %v89_v20  ;;  %p376_p4 = scmp.ne.s32.totalorder %s250_s19, %s375_s20  ;;  %p381_p6 = scmp.lt.s32.totalorder %s375_s20, %s375_s20 }
  0x5d   :  { %v264_v10 = vcvt.f32.s32 %v263_v6  ;;  %v268_v12 = vcvt.f32.s32 %v267_v8  ;;  %v270_v13 = vcvt.f32.s32 %v269_v9  ;;  %v510_v28 = vmul.f32 %v90_v21, %v90_v21 }
  0x5e   :  { %v103_v15 = vmul.u32 2246822507, %v266_v11  ;;  %v211_v35 = vsub.f32 3.0, %v504_v23  ;;  %v212_v36 = vsub.f32 3.0, %v506_v24  ;;  %p382_p7 = por %p381_p6, %p380_p5 }
  0x5f   :  { %v102_v14 = vmul.u32 2246822507, %v264_v10  ;;  %v104_v16 = vmul.u32 3266489909, %v268_v12 }
  0x60   :  { %v105_v17 = vmul.u32 3266489909, %v270_v13  ;;  %p383_p8 = pnand %p382_p7, %p376_p4 }
  0x61   :  { %v106_v18 = vadd.s32 %v104_v16, %v102_v14 }
  0x62   :  { %v107_v19 = vadd.s32 %v105_v17, %v103_v15 }
  0xda   :  { %v110_v22 = vpop.permute.xlu0 %109 }
  0xdb   :  { %v111_v25 = vadd.s32 %v110_v22, %v106_v18  ;;  %v112_v26 = vadd.s32 %v110_v22, %v107_v19 }
  0xdd   :  { %v113_v29 = vshrl.u32 %v111_v25, 16  ;;  %v114_v30 = vshrl.u32 %v112_v26, 16  ;;  %v135_v31 = vadd.s32 2246822507, %v111_v25  ;;  %v136_v32 = vadd.s32 2246822507, %v112_v26 }
  0xde   :  { %v159_v33 = vadd.s32 3266489909, %v111_v25  ;;  %v160_v34 = vadd.s32 3266489909, %v112_v26 }
  0xdf   :  { %v115_v37 = vxor.u32 %v113_v29, %v111_v25  ;;  %v116_v38 = vxor.u32 %v114_v30, %v112_v26  ;;  %v137_v39 = vshrl.u32 %v135_v31, 16  ;;  %v138_v40 = vshrl.u32 %v136_v32, 16 }
  0xe0   :  { %v161_v41 = vshrl.u32 %v159_v33, 16  ;;  %v162_v42 = vshrl.u32 %v160_v34, 16  ;;  %v183_v43 = vadd.s32 3266489909, %v135_v31  ;;  %v184_v44 = vadd.s32 3266489909, %v136_v32 }
  0xe1   :  { %v117_v45 = vmul.u32 2146121005, %v115_v37  ;;  %v118_v46 = vmul.u32 2146121005, %v116_v38  ;;  %v139_v47 = vxor.u32 %v137_v39, %v135_v31  ;;  %v140_v48 = vxor.u32 %v138_v40, %v136_v32 }
  0xe2   :  { %v163_v49 = vxor.u32 %v161_v41, %v159_v33  ;;  %v164_v50 = vxor.u32 %v162_v42, %v160_v34  ;;  %v185_v51 = vshrl.u32 %v183_v43, 16  ;;  %v186_v52 = vshrl.u32 %v184_v44, 16  ;;  %v91_v41 = vld [vmem:[#allocation8] sm:$0xff]  ;;  %v92_v42 = vld [vmem:[#allocation8 + $0x8] sm:$0xff] }
  0xe3   :  { %v119_v53 = vshrl.u32 %v117_v45, 15  ;;  %v120_v54 = vshrl.u32 %v118_v46, 15  ;;  %v141_v55 = vmul.u32 2146121005, %v139_v47  ;;  %v142_v56 = vmul.u32 2146121005, %v140_v48 }
  0xe4   :  { %v165_v57 = vmul.u32 2146121005, %v163_v49  ;;  %v166_v58 = vmul.u32 2146121005, %v164_v50  ;;  %v187_v59 = vxor.u32 %v185_v51, %v183_v43  ;;  %v188_v60 = vxor.u32 %v186_v52, %v184_v44 }
  0xe5   :  { %v121_v61 = vxor.u32 %v119_v53, %v117_v45  ;;  %v122_v62 = vxor.u32 %v120_v54, %v118_v46  ;;  %v143_v63 = vshrl.u32 %v141_v55, 15  ;;  %v144_v0 = vshrl.u32 %v142_v56, 15 }
  0xe6   :  { %v167_v1 = vshrl.u32 %v165_v57, 15  ;;  %v168_v2 = vshrl.u32 %v166_v58, 15  ;;  %v189_v3 = vmul.u32 2146121005, %v187_v59  ;;  %v190_v4 = vmul.u32 2146121005, %v188_v60 }
  0xe7   :  { %v123_v5 = vmul.u32 2221713035, %v121_v61  ;;  %v124_v6 = vmul.u32 2221713035, %v122_v62  ;;  %v145_v7 = vxor.u32 %v143_v63, %v141_v55  ;;  %v146_v8 = vxor.u32 %v144_v0, %v142_v56 }
  0xe8   :  { %v169_v9 = vxor.u32 %v167_v1, %v165_v57  ;;  %v170_v10 = vxor.u32 %v168_v2, %v166_v58  ;;  %v191_v11 = vshrl.u32 %v189_v3, 15  ;;  %v192_v12 = vshrl.u32 %v190_v4, 15 }
  0xe9   :  { %v147_v13 = vmul.u32 2221713035, %v145_v7  ;;  %v148_v14 = vmul.u32 2221713035, %v146_v8  ;;  %v125_v15 = vshrl.u32 %v123_v5, 16  ;;  %v126_v16 = vshrl.u32 %v124_v6, 16 }
  0xea   :  { %v171_v17 = vmul.u32 2221713035, %v169_v9  ;;  %v172_v18 = vmul.u32 2221713035, %v170_v10  ;;  %v193_v19 = vxor.u32 %v191_v11, %v189_v3  ;;  %v194_v20 = vxor.u32 %v192_v12, %v190_v4 }
  0xeb   :  { %v127_v21 = vxor.u32 %v125_v15, %v123_v5  ;;  %v128_v22 = vxor.u32 %v126_v16, %v124_v6  ;;  %v149_v25 = vshrl.u32 %v147_v13, 16  ;;  %v150_v26 = vshrl.u32 %v148_v14, 16 }
  0xec   :  { %v173_v29 = vshrl.u32 %v171_v17, 16  ;;  %v174_v30 = vshrl.u32 %v172_v18, 16  ;;  %v195_v31 = vmul.u32 2221713035, %v193_v19  ;;  %v196_v32 = vmul.u32 2221713035, %v194_v20 }
  0xed   :  { %v129_v33 = vand.u32 8388607, %v127_v21  ;;  %v130_v34 = vand.u32 8388607, %v128_v22  ;;  %v151_v37 = vxor.u32 %v149_v25, %v147_v13  ;;  %v152_v38 = vxor.u32 %v150_v26, %v148_v14 }
  0xee   :  { %v197_v39 = vshrl.u32 %v195_v31, 16  ;;  %v198_v40 = vshrl.u32 %v196_v32, 16  ;;  %v175_v43 = vxor.u32 %v173_v29, %v171_v17  ;;  %v176_v44 = vxor.u32 %v174_v30, %v172_v18 }
  0xef   :  { %v131_v45 = vcvt.s32.f32 %v129_v33  ;;  %v132_v46 = vcvt.s32.f32 %v130_v34  ;;  %v153_v47 = vand.u32 8388607, %v151_v37  ;;  %v154_v48 = vand.u32 8388607, %v152_v38 }
  0xf0   :  { %v177_v49 = vand.u32 8388607, %v175_v43  ;;  %v178_v50 = vand.u32 8388607, %v176_v44  ;;  %v199_v51 = vxor.u32 %v197_v39, %v195_v31  ;;  %v200_v52 = vxor.u32 %v198_v40, %v196_v32 }
  0xf1   :  { %v155_v53 = vcvt.s32.f32 %v153_v47  ;;  %v156_v54 = vcvt.s32.f32 %v154_v48  ;;  %v217_v55 = vmul.f32 2.0, %v91_v41  ;;  %v218_v56 = vmul.f32 2.0, %v92_v42 }
  0xf2   :  { %v179_v57 = vcvt.s32.f32 %v177_v49  ;;  %v180_v58 = vcvt.s32.f32 %v178_v50  ;;  %v201_v59 = vand.u32 8388607, %v199_v51  ;;  %v202_v60 = vand.u32 8388607, %v200_v52 }
  0xf3   :  { %v133_v61 = vmul.f32 1.1920929e-07, %v131_v45  ;;  %v134_v62 = vmul.f32 1.1920929e-07, %v132_v46  ;;  %v157_v63 = vmul.f32 1.1920929e-07, %v155_v53  ;;  %v158_v0 = vmul.f32 1.1920929e-07, %v156_v54 }
  0xf4   :  { %v203_v1 = vcvt.s32.f32 %v201_v59  ;;  %v204_v2 = vcvt.s32.f32 %v202_v60  ;;  %v213_v3 = vmul.f32 %v211_v35, %v508_v27  ;;  %v214_v4 = vmul.f32 %v212_v36, %v510_v28 }
  0xf5   :  { %v223_v5 = vsub.f32 %v157_v63, %v133_v61  ;;  %v224_v6 = vsub.f32 %v158_v0, %v134_v62  ;;  %v181_v7 = vmul.f32 1.1920929e-07, %v179_v57  ;;  %v182_v8 = vmul.f32 1.1920929e-07, %v180_v58 }
  0xf6   :  { %v205_v9 = vmul.f32 1.1920929e-07, %v203_v1  ;;  %v206_v10 = vmul.f32 1.1920929e-07, %v204_v2  ;;  %v215_v11 = vmul.f32 %v91_v41, %v91_v41  ;;  %v216_v12 = vmul.f32 %v92_v42, %v92_v42 }
  0xf7   :  { %v219_v13 = vsub.f32 3.0, %v217_v55  ;;  %v220_v14 = vsub.f32 3.0, %v218_v56  ;;  %v225_v15 = vmul.f32 %v223_v5, %v213_v3  ;;  %v226_v16 = vmul.f32 %v224_v6, %v214_v4 }
  0xf8   :  { %v229_v17 = vsub.f32 %v205_v9, %v181_v7  ;;  %v230_v18 = vsub.f32 %v206_v10, %v182_v8 }
  0xf9   :  { %v221_v35 = vmul.f32 %v219_v13, %v215_v11  ;;  %v222_v19 = vmul.f32 %v220_v14, %v216_v12  ;;  %v227_v24 = vadd.f32 %v225_v15, %v133_v61  ;;  %v228_v28 = vadd.f32 %v226_v16, %v134_v62 }
  0xfa   :  { %v231_v23 = vmul.f32 %v229_v17, %v213_v3  ;;  %v232_v27 = vmul.f32 %v230_v18, %v214_v4 }
  0xfc   :  { %v233_v36 = vadd.f32 %v231_v23, %v181_v7  ;;  %v234_v20 = vadd.f32 %v232_v27, %v182_v8 }
  0xfe   :  { %v235_v21 = vsub.f32 %v233_v36, %v227_v24  ;;  %v236_v22 = vsub.f32 %v234_v20, %v228_v28 }
 0x100   :  { %v237_v25 = vmul.f32 %v235_v21, %v221_v35  ;;  %v238_v26 = vmul.f32 %v236_v22, %v222_v19 }
 0x102   :  { %v239_v29 = vadd.f32 %v237_v25, %v227_v24  ;;  %v240_v30 = vadd.f32 %v238_v26, %v228_v28 }
 0x104   :  { %241 = vst [vmem:[#allocation10] sm:$0xff] %v239_v29  ;;  %242 = vst [vmem:[#allocation10 + $0x8] sm:$0xff] %v240_v30 }
 0x105   :  { %386 = shalt.err (!%p383_p8)
}
 0x106   :  { %s387_s23 = scalar_lea.hbm %s537_s5, 256 }
 0x107   :  { %p388_p9 = scmp.ne.s32.totalorder %s537_s5, %s387_s23  ;;  %p391_p10 = scmp.lt.u32.totalorder %s387_s23, %s537_s5 }
 0x109   :  { %p393_p11 = pnand %p391_p10, %p388_p9 }
 0x10b   :  { %396 = shalt.err (!%p393_p11)
}
 0x10c   :  { %252 = dma.vmem_to_hbm [thread:$0]  %s250_s19, 256, %s537_s5, [#allocation4]  }
 0x10d   :  { %403 = dma.done.wait [#allocation4], 256  }
 0x10e   :  { %404 = vsyncadd [#allocation4], 4294967040 }
 0x10f   :  { %256 = vsyncpa [#allocation3], 1 }
 0x110   :  { %257 = vsyncpa [#allocation6], 1 }
 0x111   :  { %258 = vsyncpa [#allocation9], 1 }
 0x112   :  { %259 = vsyncpa [#allocation4], 1 }

</bundles_post_ra>
